<compile_context>
chip_gen: v6e
topology: v6e:2x2x1
jax: 0.10.0
libtpu: 0.0.40
codegen_flags: <defaults>
</compile_context>

<pallas_src>
import math

import jax
import jax.numpy as jnp
from jax.experimental import pallas as pl
from jax.experimental.pallas import tpu as pltpu


# ---------------------------------------------------------------------------
# Kernels
# ---------------------------------------------------------------------------
def _transpose_tile_kernel(x_ref, o_ref):
    # x_ref: (tr, tc) tile of the input; o_ref: (tc, tr) tile of the output.
    o_ref[...] = x_ref[...].T


def _copy_tile_kernel(x_ref, o_ref):
    # The swapped dims are handled entirely by the BlockSpec index maps; the
    # last two (layout-relevant) dims are untouched, so this is a plain copy.
    o_ref[...] = x_ref[...]


# ---------------------------------------------------------------------------
# Wrappers
# ---------------------------------------------------------------------------
def _tile(dim):
    """Largest lane-friendly tile (multiple of 128) dividing `dim`, else full dim."""
    for cand in (512, 256, 128):
        if dim % cand == 0:
            return cand
    return dim


def _swap_last_two(x):
    """x[..., R, C] -> x[..., C, R] via a tiled Pallas transpose kernel."""
    *lead, r, c = x.shape
    b = math.prod(lead) if lead else 1
    x3 = x.reshape(b, r, c)               # free reshape; leading dims fold into batch

    tr, tc = _tile(r), _tile(c)           # keeps in/out blocks VMEM-bounded for big R/C
    grid = (b, r // tr, c // tc)

    out = pl.pallas_call(
        _transpose_tile_kernel,
        out_shape=jax.ShapeDtypeStruct((b, c, r), x.dtype),
        grid_spec=pltpu.PrefetchScalarGridSpec(
            num_scalar_prefetch=0,
            grid=grid,
            in_specs=[pl.BlockSpec((pl.Squeezed(), tr, tc),
                                   lambda i, j, k: (i, j, k))],
            out_specs=pl.BlockSpec((pl.Squeezed(), tc, tr),
                                   lambda i, j, k: (i, k, j)),
        ),
        compiler_params=pltpu.CompilerParams(
            dimension_semantics=("parallel", "parallel", "parallel")),
    )(x3)
    return out.reshape(*lead, c, r)


def _swap_leading(x, a, b):
    """Swap dims a < b, both strictly in front of the last two dims (rank >= 4)."""
    r = x.ndim
    shape = x.shape
    perm = list(range(r))
    perm[a], perm[b] = perm[b], perm[a]
    out_shape = tuple(shape[p] for p in perm)

    n_lead = r - 2
    lead_block = (pl.Squeezed(),) * n_lead
    tail_block = (shape[-2], shape[-1])   # full last-two dims -> always legal blocks

    def in_index(*g):
        return tuple(g) + (0, 0)

    def out_index(*g):
        # Output leading dim k holds the data of input dim perm[k].
        return tuple(g[perm[k]] for k in range(n_lead)) + (0, 0)

    return pl.pallas_call(
        _copy_tile_kernel,
        out_shape=jax.ShapeDtypeStruct(out_shape, x.dtype),
        grid_spec=pltpu.PrefetchScalarGridSpec(
            num_scalar_prefetch=0,
            grid=shape[:n_lead],
            in_specs=[pl.BlockSpec(lead_block + tail_block, in_index)],
            out_specs=pl.BlockSpec(lead_block + tail_block, out_index),
        ),
        compiler_params=pltpu.CompilerParams(
            dimension_semantics=("parallel",) * n_lead),
    )(x)


def transpose_forward(x, dim_a, dim_b):
    """Pallas implementation of x.transpose(dim_a, dim_b)."""
    r = x.ndim
    a = dim_a % r
    b = dim_b % r
    if a == b:
        return x
    a, b = min(a, b), max(a, b)
    if (a, b) == (r - 2, r - 1):
        return _swap_last_two(x)
    if b <= r - 3:
        return _swap_leading(x, a, b)
    # TODO(synk): a swap mixing a leading dim with one of the last two dims
    # needs an in-kernel >2-D transpose or sub-(8,128) blocks; not implemented.
    raise NotImplementedError(
        f"Pallas Transpose: unsupported dim pair ({dim_a}, {dim_b}) for rank-{r} input")


class PallasTranspose:
    """Drop-in equivalent of the PyTorch Transpose(dim_a, dim_b) module."""

    def __init__(self, dim_a, dim_b):
        self.dim_a = dim_a
        self.dim_b = dim_b

    def __call__(self, x):
        return transpose_forward(x, self.dim_a, self.dim_b)


# ---------------------------------------------------------------------------
# Demo / self-check
# ---------------------------------------------------------------------------
if __name__ == "__main__":
    key = jax.random.PRNGKey(0)
    k1, k2 = jax.random.split(key)

    # Canonical LayoutLM usage: swap seq and hidden dims of (B, N, H).
    B, N, H = 2, 8, 32
    x = jax.random.normal(k1, (B, N, H), jnp.float32)

    y = jax.block_until_ready(PallasTranspose(1, 2)(x))
    ref = jnp.swapaxes(x, 1, 2)
    assert y.shape == (B, H, N), y.shape
    assert bool(jnp.array_equal(y, ref)), "last-two-dims swap mismatch"

    # Negative-dim spelling hits the same path.
    y_neg = jax.block_until_ready(PallasTranspose(-2, -1)(x))
    assert bool(jnp.array_equal(y_neg, ref)), "negative-dim swap mismatch"

    # Swap of two leading dims of a rank-4 tensor (pure index-remap path).
    x4 = jax.random.normal(k2, (2, 3, 8, 32), jnp.float32)
    y4 = jax.block_until_ready(PallasTranspose(0, 1)(x4))
    assert y4.shape == (3, 2, 8, 32), y4.shape
    assert bool(jnp.array_equal(y4, jnp.swapaxes(x4, 0, 1))), "leading-dim swap mismatch"

    print("KERNEL_OK")
</pallas_src>

<mosaic_0001>
module attributes {stable_mosaic.version = 11 : i64} {
  func.func @_transpose_tile_kernel(%arg0: i32, %arg1: i32, %arg2: i32, %arg3: memref<1x8x32xf32, #tpu.memory_space<vmem>>, %arg4: memref<1x32x8xf32, #tpu.memory_space<vmem>>) attributes {dimension_semantics = [#tpu.dimension_semantics<parallel>, #tpu.dimension_semantics<parallel>, #tpu.dimension_semantics<parallel>], iteration_bounds = array<i64: 2, 1, 1>, scalar_prefetch = 0 : i64, scratch_operands = 0 : i64, tpu.core_type = #tpu.core_type<tc>, window_params = [{transform_indices = @transform_0, window_bounds = array<i64: 1, 8, 32>}, {transform_indices = @transform_1, window_bounds = array<i64: 1, 32, 8>}]} {
    %c0 = arith.constant 0 : index
    %c0_0 = arith.constant 0 : index
    %c0_1 = arith.constant 0 : index
    %0 = vector.load %arg3[%c0, %c0_0, %c0_1] : memref<1x8x32xf32, #tpu.memory_space<vmem>>, vector<1x8x32xf32>
    %1 = vector.shape_cast %0 : vector<1x8x32xf32> to vector<8x32xf32>
    %2 = tpu.transpose %1, [1, 0] : vector<8x32xf32> -> vector<32x8xf32>
    %c0_2 = arith.constant 0 : index
    %c0_3 = arith.constant 0 : index
    %c0_4 = arith.constant 0 : index
    %3 = vector.load %arg4[%c0_2, %c0_3, %c0_4] : memref<1x32x8xf32, #tpu.memory_space<vmem>>, vector<1x32x8xf32>
    %4 = vector.shape_cast %3 : vector<1x32x8xf32> to vector<32x8xf32>
    %5 = vector.shape_cast %2 : vector<32x8xf32> to vector<1x32x8xf32>
    tpu.vector_store %arg4[%c0_2, %c0_3, %c0_4], %5 {strides = array<i32>} : memref<1x32x8xf32, #tpu.memory_space<vmem>>, vector<1x32x8xf32>,
    return
  }
  func.func @transform_0(%arg0: i32, %arg1: i32, %arg2: i32) -> (i32, i32, i32) {
    %c0_i32 = arith.constant 0 : i32
    return %arg0, %arg1, %arg2 : i32, i32, i32
  }
  func.func @transform_1(%arg0: i32, %arg1: i32, %arg2: i32) -> (i32, i32, i32) {
    %c0_i32 = arith.constant 0 : i32
    return %arg0, %arg2, %arg1 : i32, i32, i32
  }
}

</mosaic_0001>

<bundles_post_ra>
// kernel: tpu_custom_call.1
= control target key start
LH: loop header
LB: loop body
LE: loop exit
PB: predicated region body
PF: predicated region fallthrough
CT: control target
= control target key end

     0   :  { %6 = vsyncpa [#allocation3], 0  ;;  %s583_s0 = inlined_call_operand.hbm [shape: f32[2,8,32], index: 0, kind: input, shape index: {}]   ;;  %s584_s1 = inlined_call_operand.vmem [shape: f32[2,32,8], index: 1, kind: output, shape index: {}]  }
   0x1   :  { %8 = vsyncpa [#allocation3 + $0x1], 0  ;;  %s483_s6 = smov 0   ;;  %s485_s7 = smov 0  }
   0x2   :  { %s487_s8 = smov 0   ;;  %s489_s9 = smov 0  }
   0x3   :  { %s491_s10 = smov 0   ;;  %s493_s11 = smov 0  }
   0x4 LB: > { %s323_s12 = sadd.s32 4294967295, %s470_s11   ;;  %s33_s13 = sadd.s32 1, %s466_s10  ;;  %s470_s11 = sphi %s493_s11, %s14_s11   ;;  %s466_s10 = sphi %s491_s10, %s592_s10   ;;  %s462_s9 = sphi %s489_s9, %s591_s9   ;;  %s458_s8 = sphi %s487_s8, %s590_s8   ;;  %s454_s7 = sphi %s485_s7, %s589_s7   ;;  %s450_s6 = sphi %s483_s6, %s588_s6  }
   0x5   : > { %p35_p0 = scmp.ge.s32.totalorder %s33_s13, 2  ;;  %s44_s14 = sadd.s32 1, %s458_s8 }
   0x6   : > { %p51_p1 = scmp.ne.s32.totalorder %s458_s8, %s454_s7  ;;  %p52_p2 = scmp.eq.s32.totalorder %s470_s11, 0 }
   0x7   : > { %s594_s13 = smov (%p35_p0, %s33_s13), 0  ;;  %p57_p4 = scmp.ne.s32.totalorder %s454_s7, %s450_s6 }
   0x8   : > { %p519_p3 = por %p52_p2, %p51_p1  ;;  %s37_s16 = ssub.s32 %s466_s10, %s594_s13 }
   0x9   : > { %p58_p5 = scmp.eq.s32.totalorder %s323_s12, 0  ;;  %p42_p6 = scmp.eq.s32.totalorder %s37_s16, 0 }
   0xa   : > { %p342_p8 = scmp.lt.s32.totalorder %s470_s11, 2  ;;  %s111_s19 = sand.u32 1, %s458_s8  }
   0xb   : > { %p526_p7 = por %p58_p5, %p57_p4  ;;  %s328_s20 = sshll.u32 %s466_s10, 7 }
   0xc   : > { %s532_s18 = scalar_select %p42_p6, %s458_s8, %s44_s14  }
   0xd   : > { %s327_s21 = sshll.u32 %s111_s19, 3  ;;  %s122_s24 = scalar_lea.hbm %s583_s0, %s328_s20 }
   0xe   : > { %s115_s25 = scalar_lea.vmem [#allocation2], %s327_s21  ;;  %p541_p9 = pnand %p342_p8, %p519_p3 }
   0xf   : > { %s124_s26 = sshll.u32 %s115_s25, 4  ;;  %p329_p10 = scmp.ge.s32.totalorder %s470_s11, 1  ;;  %s125_s26 = int_to_ptr.vmem [resolvable:$true] %s124_s26 }
  0x10   : > { %p129_p11 = scmp.lt.s32.totalorder %s470_s11, 3  ;;  %s112_s28 = scalar_lea.sflag [#allocation3], %s111_s19 }
  0x11   : > { %p394_p12 = pneg %p541_p9  ;;  %s405_s29 = scalar_lea.vmem %s125_s26, 128 }
  0x12   : > { %p406_p13 = scmp.ne.s32.totalorder %s125_s26, %s405_s29  ;;  %s472_s30 = smov [#allocation2]  }
  0x13   : > { %s410_s2 = sshll.u32 %s472_s30, 4  ;;  %s411_s2 = int_to_ptr.vmem [resolvable:$false] %s410_s2 }
  0x14   : > { %p408_p0 = pnand %p406_p13, %p394_p12  ;;  %s412_s3 = scalar_lea.vmem %s411_s2, 256 }
  0x15   : > { %p413_p2 = scmp.lt.s32.totalorder %s125_s26, %s411_s2  ;;  %p414_p3 = scmp.lt.s32.totalorder %s412_s3, %s405_s29 }
  0x16   : > { %p409_p1 = pneg %p408_p0 }
  0x17   : > { %p415_p4 = por %p414_p3, %p413_p2 }
  0x19   : > { %p416_p5 = pnand %p415_p4, %p409_p1 }
  0x1b   : > { %419 = shalt.err (!%p416_p5)
}
  0x1c   : > { %341 = dma.hbm_to_vmem [thread:$0]  (!%p541_p9), %s122_s24, 128, %s125_s26, %s112_s28  }
  0x1d   : > { %p130_p6 = pnand %p329_p10, %p129_p11 }
  0x1e   : > { %s135_s4 = sand.u32 (!%p130_p6), 1, %s454_s7  }
  0x1f   : > { %133 = sbr.rel (%p130_p6) target bundleno = 176 (0xb0), region = 24  ;;  %s330_s5 = sshll.u32 (!%p130_p6), %s135_s4, 3 }
  0x20   : > { %s136_s6 = scalar_lea.sflag (!%p130_p6), [#allocation3], %s135_s4  ;;  %s139_s12 = scalar_lea.vmem (!%p130_p6), [#allocation2], %s330_s5 }
  0x24   : > { %445 = dma.done.wait (%p526_p7), %s136_s6, 128  }
  0x25   : > { %447 = vsyncadd (%p526_p7), %s136_s6, 4294967168  ;;  %v178_v0 = vld [vmem:[%s139_s12] sm:$0xff]  ;;  %p166_p8 = scmp.lt.s32.totalorder %s462_s9, 1  ;;  %vm211_vm0 = vcmask 64512  }
  0x26   : > { %179 = vxpose.xlu0.b32.start.end [1/1] (short) (narrow) %v178_v0, 32 }
  0x27   : > { %s596_s9 = smov (!%p166_p8, %s462_s9), 1 }
  0x28   : > { %s335_s14 = sshll.u32 %s596_s9, 5 }
  0x29   : > { %s176_s19 = scalar_lea.vmem %s584_s1, %s335_s14 }
  0xa2   : > { %v195_v1 = vpop.trf.xlu0 }
  0xa3   : > { %212 = vst.msk [vmem:[%s176_s19] sm:$0xff] %vm211_vm0, %v195_v1 }
  0xa6   : > { %v196_v2 = vpop.trf.xlu0 }
  0xa7   : > { %213 = vst.msk [vmem:[%s176_s19 + $0x8] sm:$0xff] %vm211_vm0, %v196_v2 }
  0xaa   : > { %v197_v3 = vpop.trf.xlu0 }
  0xab   : > { %214 = vst.msk [vmem:[%s176_s19 + $0x10] sm:$0xff] %vm211_vm0, %v197_v3 }
  0xae   : > { %v198_v4 = vpop.trf.xlu0 }
  0xaf   : > { %215 = vst.msk [vmem:[%s176_s19 + $0x18] sm:$0xff] %vm211_vm0, %v198_v4 }
  0xb0 PF: > { %s14_s11 = sadd.s32 1, %s470_s11   ;;  %s588_s6 = smov %s454_s7 }
  0xb1   : > { %p11_p7 = scmp.ge.s32.totalorder %s14_s11, 4   ;;  %s589_s7 = smov %s458_s8 }
  0xb2   : > { %s590_s8 = smov %s532_s18  ;;  %s591_s9 = smov %s466_s10 }
  0xb3   : > { %s592_s10 = smov %s594_s13  ;;  %13 = sbr.rel (!%p11_p7) target bundleno = 4 (0x4), region = 64 }
  0xb8   :  { %252 = vsyncpa [#allocation3], 1 }
  0xb9   :  { %254 = vsyncpa [#allocation3 + $0x1], 1 }

</bundles_post_ra>
